<compile_context>
chip_gen: v7x
topology: tpu7x:2x2x1
jax: 0.10.0
libtpu: 0.0.40
codegen_flags: <defaults>
</compile_context>

<pallas_src>
import jax
import jax.numpy as jnp
from jax import lax
from jax.experimental import pallas as pl
from jax.experimental.pallas import tpu as pltpu


def _make_forward_kernel(widths):
    """Kernel factory: closes over the (static) per-feature widths."""
    n = len(widths)
    offsets = []
    off = 0
    for d in widths:
        offsets.append(off)
        off += d
    D = off

    def kernel(*refs):
        x_refs = refs[:n]                                  # each (TB, d_i), float dtype
        w1_ref, misc_ref, b2_ref, o_ref, xcat_ref = refs[n:]
        # w1_ref:  (D, H)  bf16      misc_ref: (2, H) f32 -> row 0 = b1, row 1 = w2^T
        # b2_ref:  (1,)    f32 SMEM  o_ref:    (1, 1, TB)  xcat_ref: (TB, D) f32 scratch

        # Fused concat: assemble the (TB, D) activation tile in VMEM at static lane
        # offsets. The concatenated matrix never exists in HBM.
        for i in range(n):
            xcat_ref[:, offsets[i]:offsets[i] + widths[i]] = (
                x_refs[i][...].astype(jnp.float32))

        # First Linear: one K=D MXU matmul (bf16 operands, f32 accumulation).
        h = jnp.dot(xcat_ref[...].astype(jnp.bfloat16), w1_ref[...],
                    preferred_element_type=jnp.float32)    # (TB, H)

        # Bias + ReLU on the VPU (f32).
        h = jnp.maximum(h + misc_ref[0:1, :], 0.0)

        # Second Linear (H -> 1) on the MXU, producing (1, TB) directly so the store
        # stays lane-dense (batch on lanes) with zero relayout.
        z = lax.dot_general(
            misc_ref[1:2, :].astype(jnp.bfloat16),          # (1, H)
            h.astype(jnp.bfloat16),                         # (TB, H)
            dimension_numbers=(((1,), (1,)), ((), ())),
            preferred_element_type=jnp.float32)             # (1, TB)
        p = jax.nn.sigmoid(z + b2_ref[0])                   # EUP

        o_ref[...] = p.reshape(1, 1, -1).astype(o_ref.dtype)   # (1, 1, TB)

    return kernel


def _pick_batch_tile(B, requested):
    """Lane-aligned batch tile; keep >= 2 grid steps when B allows (v7x megacore)."""
    lane = 128
    tb = max(lane, min(requested, 1024))
    tb = (tb // lane) * lane
    b_up = pl.cdiv(B, lane) * lane
    if b_up >= 2 * lane:                       # enough rows for two tiles
        tb = min(tb, b_up // 2)
        tb = max(lane, (tb // lane) * lane)
    return tb


def trainer_forward(x_dict, params, *, tile_b=512):
    """Equivalent of BaseTrainer.forward: concat dict values on dim=1, run base_model.

    The concat is fused into the kernel (VMEM assembly at static lane offsets), so the
    concatenated activation matrix is never materialized in HBM.
    """
    # _preprocess: dict insertion order, mirror torch.cat(list(x.values()), 1).float().
    feats = []
    for v in x_dict.values():
        f = v.reshape(v.shape[0], -1)          # mirror the unsqueeze(1) in _chunk_to_tensor
        if not jnp.issubdtype(f.dtype, jnp.floating):
            f = f.astype(jnp.float32)          # .float(); floating inputs (incl. bf16) pass through
        feats.append(f)
    n = len(feats)
    widths = [f.shape[1] for f in feats]
    B = feats[0].shape[0]
    D = sum(widths)

    # Parameters: W1 bf16 MXU operand; b1 / w2^T packed into one (2, H) f32 block.
    w1 = params["w1"].astype(jnp.bfloat16)                       # (D, H)
    H = w1.shape[1]
    misc = jnp.concatenate(
        [params["b1"].astype(jnp.float32).reshape(1, H),
         params["w2"].astype(jnp.float32).reshape(1, H)], axis=0)  # (2, H)
    b2 = params["b2"].astype(jnp.float32).reshape(1)               # (1,) SMEM scalar

    tb = _pick_batch_tile(B, tile_b)
    num_tiles = pl.cdiv(B, tb)
    # No wrapper-side padding: a ragged last block relies on Pallas grid-edge clamping;
    # all math is row-independent and the extra rows are sliced off below.

    x_specs = [pl.BlockSpec((tb, d), lambda i: (i, 0)) for d in widths]
    misc_specs = [
        pl.BlockSpec((D, H), lambda i: (0, 0)),                    # W1 (grid-invariant)
        pl.BlockSpec((2, H), lambda i: (0, 0)),                    # [b1; w2^T]
        pl.BlockSpec(memory_space=pltpu.MemorySpace.SMEM),         # b2 scalar
    ]

    x_bytes = sum(f.shape[0] * f.shape[1] * f.dtype.itemsize for f in feats)
    cost = pl.CostEstimate(
        flops=2 * B * D * H + 2 * B * H + 2 * B * H,
        transcendentals=B,
        bytes_accessed=x_bytes + D * H * 2 + 2 * H * 4 + num_tiles * tb * 4,
    )

    out = pl.pallas_call(
        _make_forward_kernel(widths),
        out_shape=jax.ShapeDtypeStruct((num_tiles, 1, tb), jnp.float32),
        grid=(num_tiles,),
        in_specs=x_specs + misc_specs,
        out_specs=pl.BlockSpec((1, 1, tb), lambda i: (i, 0, 0)),
        scratch_shapes=[pltpu.VMEM((tb, D), jnp.float32)],
        compiler_params=pltpu.CompilerParams(
            dimension_semantics=("parallel",)),
        cost_estimate=cost,
    )(*feats, w1, misc, b2)

    # Layout plumbing back to the module's (B, 1) output.
    return out.reshape(-1, 1)[:B]


def init_params(key, in_dim, hidden_dim):
    """Deterministic synthetic base_model parameters (Linear-ReLU-Linear-Sigmoid)."""
    k1, k2, k3, k4 = jax.random.split(key, 4)
    w1 = jax.random.normal(k1, (in_dim, hidden_dim), jnp.float32) * 0.05
    b1 = jax.random.normal(k2, (1, hidden_dim), jnp.float32) * 0.01
    w2 = jax.random.normal(k3, (hidden_dim, 1), jnp.float32) * 0.05
    b2 = jax.random.normal(k4, (1, 1), jnp.float32) * 0.01
    return {"w1": w1, "b1": b1, "w2": w2, "b2": b2}


if __name__ == "__main__":
    key = jax.random.PRNGKey(0)
    kx1, kx2, kx3, kp = jax.random.split(key, 4)

    B = 256
    # Dict of already-preprocessed feature tensors (what BaseTrainer.forward receives):
    # two "sparse" features already reduced to dense embeddings + one dense feature block.
    # Widths chosen so D = 128 and H = 128 (lane-aligned).
    x_dict = {
        "user_emb":   jax.random.normal(kx1, (B, 64), jnp.float32),
        "item_emb":   jax.random.normal(kx2, (B, 32), jnp.float32),
        "dense_feat": jax.random.uniform(kx3, (B, 32), jnp.float32),
    }
    D = sum(v.shape[1] for v in x_dict.values())   # 128
    H = 128

    params = init_params(kp, D, H)

    y_pred = trainer_forward(x_dict, params)
    jax.block_until_ready(y_pred)

    # Pure-JAX f32 reference of the same forward (concat -> Linear -> ReLU -> Linear -> Sigmoid).
    x_ref = jnp.concatenate([v.astype(jnp.float32) for v in x_dict.values()], axis=1)
    h_ref = jnp.maximum(x_ref @ params["w1"] + params["b1"], 0.0)
    ref = jax.nn.sigmoid(h_ref @ params["w2"] + params["b2"])

    assert y_pred.shape == (B, 1)
    max_err = float(jnp.max(jnp.abs(y_pred - ref)))
    # bf16 MXU operands in both layers (f32 accumulate) vs a full-f32 reference.
    assert max_err < 1e-2, f"mismatch vs reference: max abs err {max_err}"

    print("KERNEL_OK")
</pallas_src>

<mosaic_0001>
module attributes {stable_mosaic.version = 11 : i64} {
  func.func @kernel(%arg0: i32, %arg1: memref<128x64xf32, #tpu.memory_space<vmem>>, %arg2: memref<128x32xf32, #tpu.memory_space<vmem>>, %arg3: memref<128x32xf32, #tpu.memory_space<vmem>>, %arg4: memref<128x128xbf16, #tpu.memory_space<vmem>>, %arg5: memref<2x128xf32, #tpu.memory_space<vmem>>, %arg6: memref<1xf32, #tpu.memory_space<smem>>, %arg7: memref<1x1x128xf32, #tpu.memory_space<vmem>>, %arg8: memref<128x128xf32, #tpu.memory_space<vmem>>) attributes {dimension_semantics = [#tpu.dimension_semantics<parallel>], iteration_bounds = array<i64: 2>, scalar_prefetch = 0 : i64, scratch_operands = 1 : i64, tpu.core_type = #tpu.core_type<tc>, window_params = [{transform_indices = @transform_0, window_bounds = array<i64: 128, 64>}, {transform_indices = @transform_1, window_bounds = array<i64: 128, 32>}, {transform_indices = @transform_2, window_bounds = array<i64: 128, 32>}, {pipeline_mode = #tpu.pipeline_mode<synchronous>, transform_indices = @transform_3, window_bounds = array<i64: 128, 128>}, {pipeline_mode = #tpu.pipeline_mode<synchronous>, transform_indices = @transform_4, window_bounds = array<i64: 2, 128>}, {transform_indices = @transform_5, window_bounds = array<i64: 1>}, {transform_indices = @transform_6, window_bounds = array<i64: 1, 1, 128>}]} {
    %c0 = arith.constant 0 : index
    %c0_0 = arith.constant 0 : index
    %0 = vector.load %arg1[%c0, %c0_0] : memref<128x64xf32, #tpu.memory_space<vmem>>, vector<128x64xf32>
    %c0_1 = arith.constant 0 : index
    %c0_2 = arith.constant 0 : index
    %1 = vector.load %arg8[%c0_1, %c0_2] : memref<128x128xf32, #tpu.memory_space<vmem>>, vector<128x64xf32>
    tpu.vector_store %arg8[%c0_1, %c0_2], %0 {strides = array<i32>} : memref<128x128xf32, #tpu.memory_space<vmem>>, vector<128x64xf32>,
    %c0_3 = arith.constant 0 : index
    %c0_4 = arith.constant 0 : index
    %2 = vector.load %arg2[%c0_3, %c0_4] : memref<128x32xf32, #tpu.memory_space<vmem>>, vector<128x32xf32>
    %c0_5 = arith.constant 0 : index
    %c64 = arith.constant 64 : index
    %3 = vector.load %arg8[%c0_5, %c64] : memref<128x128xf32, #tpu.memory_space<vmem>>, vector<128x32xf32>
    tpu.vector_store %arg8[%c0_5, %c64], %2 {strides = array<i32>} : memref<128x128xf32, #tpu.memory_space<vmem>>, vector<128x32xf32>,
    %c0_6 = arith.constant 0 : index
    %c0_7 = arith.constant 0 : index
    %4 = vector.load %arg3[%c0_6, %c0_7] : memref<128x32xf32, #tpu.memory_space<vmem>>, vector<128x32xf32>
    %c0_8 = arith.constant 0 : index
    %c96 = arith.constant 96 : index
    %5 = vector.load %arg8[%c0_8, %c96] : memref<128x128xf32, #tpu.memory_space<vmem>>, vector<128x32xf32>
    tpu.vector_store %arg8[%c0_8, %c96], %4 {strides = array<i32>} : memref<128x128xf32, #tpu.memory_space<vmem>>, vector<128x32xf32>,
    %c0_9 = arith.constant 0 : index
    %c0_10 = arith.constant 0 : index
    %6 = vector.load %arg8[%c0_9, %c0_10] : memref<128x128xf32, #tpu.memory_space<vmem>>, vector<128x128xf32>
    %7 = arith.truncf %6 : vector<128x128xf32> to vector<128x128xbf16>
    %c0_11 = arith.constant 0 : index
    %c0_12 = arith.constant 0 : index
    %8 = vector.load %arg4[%c0_11, %c0_12] : memref<128x128xbf16, #tpu.memory_space<vmem>>, vector<128x128xbf16>
    %cst = arith.constant dense<0.000000e+00> : vector<128x128xf32>
    %9 = tpu.matmul %7, %8, %cst {dimension_numbers = #tpu.dot_dimension_numbers<[1], [0], [0], [1], [0, 0, 1, 1], [], []>} : vector<128x128xbf16>, vector<128x128xbf16>, vector<128x128xf32> -> vector<128x128xf32>
    %c0_13 = arith.constant 0 : index
    %c0_14 = arith.constant 0 : index
    %10 = vector.load %arg5[%c0_13, %c0_14] : memref<2x128xf32, #tpu.memory_space<vmem>>, vector<1x128xf32>
    %11 = vector.broadcast %10 : vector<1x128xf32> to vector<128x128xf32>
    %12 = arith.addf %9, %11 : vector<128x128xf32>
    %cst_15 = arith.constant 0.000000e+00 : f32
    %13 = vector.broadcast %cst_15 : f32 to vector<128x128xf32>
    %14 = arith.maximumf %12, %13 : vector<128x128xf32>
    %c1 = arith.constant 1 : index
    %c0_16 = arith.constant 0 : index
    %15 = vector.load %arg5[%c1, %c0_16] : memref<2x128xf32, #tpu.memory_space<vmem>>, vector<1x128xf32>
    %16 = arith.truncf %15 : vector<1x128xf32> to vector<1x128xbf16>
    %17 = arith.truncf %14 : vector<128x128xf32> to vector<128x128xbf16>
    %cst_17 = arith.constant dense<0.000000e+00> : vector<1x128xf32>
    %18 = tpu.matmul %16, %17, %cst_17 {dimension_numbers = #tpu.dot_dimension_numbers<[1], [1], [0], [0], [0, 0, 1, 0], [], []>} : vector<1x128xbf16>, vector<128x128xbf16>, vector<1x128xf32> -> vector<1x128xf32>
    %c0_18 = arith.constant 0 : index
    %19 = memref.load %arg6[%c0_18] : memref<1xf32, #tpu.memory_space<smem>>
    %20 = vector.broadcast %19 : f32 to vector<1x128xf32>
    %21 = arith.addf %18, %20 : vector<1x128xf32>
    %22 = arith.negf %21 : vector<1x128xf32>
    %23 = math.exp %22 : vector<1x128xf32>
    %cst_19 = arith.constant 1.000000e+00 : f32
    %24 = vector.broadcast %cst_19 : f32 to vector<1x128xf32>
    %25 = arith.addf %24, %23 : vector<1x128xf32>
    %26 = arith.divf %24, %25 : vector<1x128xf32>
    %27 = vector.shape_cast %26 : vector<1x128xf32> to vector<1x1x128xf32>
    %c0_20 = arith.constant 0 : index
    %c0_21 = arith.constant 0 : index
    %c0_22 = arith.constant 0 : index
    %28 = vector.load %arg7[%c0_20, %c0_21, %c0_22] : memref<1x1x128xf32, #tpu.memory_space<vmem>>, vector<1x1x128xf32>
    tpu.vector_store %arg7[%c0_20, %c0_21, %c0_22], %27 {strides = array<i32>} : memref<1x1x128xf32, #tpu.memory_space<vmem>>, vector<1x1x128xf32>,
    return
  }
  func.func @transform_0(%arg0: i32) -> (i32, i32) {
    %c0_i32 = arith.constant 0 : i32
    %c0_i32_0 = arith.constant 0 : i32
    return %arg0, %c0_i32 : i32, i32
  }
  func.func @transform_1(%arg0: i32) -> (i32, i32) {
    %c0_i32 = arith.constant 0 : i32
    %c0_i32_0 = arith.constant 0 : i32
    return %arg0, %c0_i32 : i32, i32
  }
  func.func @transform_2(%arg0: i32) -> (i32, i32) {
    %c0_i32 = arith.constant 0 : i32
    %c0_i32_0 = arith.constant 0 : i32
    return %arg0, %c0_i32 : i32, i32
  }
  func.func @transform_3(%arg0: i32) -> (i32, i32) {
    %c0_i32 = arith.constant 0 : i32
    %c0_i32_0 = arith.constant 0 : i32
    %c0_i32_1 = arith.constant 0 : i32
    return %c0_i32, %c0_i32_0 : i32, i32
  }
  func.func @transform_4(%arg0: i32) -> (i32, i32) {
    %c0_i32 = arith.constant 0 : i32
    %c0_i32_0 = arith.constant 0 : i32
    %c0_i32_1 = arith.constant 0 : i32
    return %c0_i32, %c0_i32_0 : i32, i32
  }
  func.func @transform_5(%arg0: i32) -> i32 {
    %c0_i32 = arith.constant 0 : i32
    %c0_i32_0 = arith.constant 0 : i32
    return %c0_i32 : i32
  }
  func.func @transform_6(%arg0: i32) -> (i32, i32, i32) {
    %c0_i32 = arith.constant 0 : i32
    %c0_i32_0 = arith.constant 0 : i32
    %c0_i32_1 = arith.constant 0 : i32
    return %arg0, %c0_i32, %c0_i32_0 : i32, i32, i32
  }
}

</mosaic_0001>

<bundles_post_ra>
// kernel: tpu_custom_call.1
= control target key start
LH: loop header
LB: loop body
LE: loop exit
PB: predicated region body
PF: predicated region fallthrough
CT: control target
= control target key end

     0   :  { %s1421_s0 = inlined_call_operand.vmem [shape: f32[256,64], index: 0, kind: input, shape index: {}]   ;;  %s1422_s1 = inlined_call_operand.vmem [shape: f32[256,32], index: 1, kind: input, shape index: {}]   ;;  %s1423_s2 = inlined_call_operand.vmem [shape: f32[256,32], index: 2, kind: input, shape index: {}]   ;;  %s1424_s3 = inlined_call_operand.vmem [shape: bf16[128,128], index: 3, kind: input, shape index: {}]   ;;  %s1425_s4 = inlined_call_operand.vmem [shape: f32[2,128], index: 4, kind: input, shape index: {}]   ;;  %s1426_s5 = inlined_call_operand.<no memory space> [shape: f32[1], index: 5, kind: input, shape index: {}]   ;;  %s1427_s6 = inlined_call_operand.hbm [shape: f32[2,1,128], index: 6, kind: output, shape index: {}]  }
   0x1   :  { %11 = sst [smem:[#allocation3]] %s1426_s5 }
   0x2   :  { %12 = vsyncpa [#allocation5], 0 }
   0x3   :  { %14 = vsyncpa [#allocation5 + $0x1], 0  ;;  %s1143_s23 = smov 0   ;;  %s1145_s24 = smov 0  }
   0x4   :  { %s1147_s25 = smov 0   ;;  %s1149_s26 = smov 0  }
   0x5 LB: > { %s880_s5 = sadd.s32 4294967295, %s1098_s26   ;;  %s881_s27 = sadd.s32 4294967294, %s1098_s26   ;;  %s1098_s26 = sphi %s1149_s26, %s1433_s26   ;;  %s1094_s25 = sphi %s1147_s25, %s1432_s25   ;;  %s1090_s24 = sphi %s1145_s24, %s1431_s24   ;;  %s1086_s23 = sphi %s1143_s23, %s1430_s23  }
   0x6   : > { %s1166_s28 = sadd.s32 1, %s1098_s26   ;;  %s168_s29 = sadd.s32 1, %s1094_s25 }
   0x7   : > { %s165_s30 = ssub.s32 %s1098_s26, %s1166_s28  ;;  %p178_p0 = scmp.ne.s32.totalorder %s1094_s25, %s1090_s24 }
   0x8   : > { %p166_p1 = scmp.eq.s32.totalorder %s165_s30, 0  ;;  %p179_p2 = scmp.eq.s32.totalorder %s880_s5, 1 }
   0x9   : > { %p184_p3 = scmp.ne.s32.totalorder %s1090_s24, %s1086_s23  ;;  %p185_p4 = scmp.eq.s32.totalorder %s881_s27, 1 }
   0xa   : > { %s1176_s7 = scalar_select %p166_p1, %s1094_s25, %s168_s29  }
   0xb   : > { %p1178_p5 = por %p179_p2, %p178_p0  ;;  %p1182_p6 = por %p185_p4, %p184_p3 }
   0xc   : > { %p884_p7 = scmp.ge.s32.totalorder %s1098_s26, 1  ;;  %p239_p8 = scmp.lt.s32.totalorder %s1098_s26, 3 }
   0xe   : > { %p240_p9 = pnand %p884_p7, %p239_p8 }
   0xf   : > { %s1188_s10 = sshll.u32 (!%p240_p9), %s880_s5, 4  ;;  %v1024_v0 = vld [vmem:[%s1424_s3] sm:$0xff] (!%p240_p9)   ;;  %v1025_v1 = vld [vmem:[%s1424_s3 + $0x8] sm:$0xff] (!%p240_p9)   ;;  %v1026_v2 = vld [vmem:[%s1424_s3 + $0x10] sm:$0xff] (!%p240_p9)   ;;  %s1100_s22 = smov (!%p240_p9), 64   ;;  %vm313_vm0 = vcmask (!%p240_p9), 523264  }
  0x10   : > { %243 = sbr.rel (%p240_p9) target bundleno = 703 (0x2bf), region = 44  ;;  %p279_p10 = scmp.lt.s32.totalorder (!%p240_p9), %s1188_s10, 31  ;;  %929 = vmatprep.subr.bf16.mxu0 (!%p240_p9), %v1024_v0  ;;  %v1027_v7 = vld [vmem:[%s1424_s3 + $0x18] sm:$0xff] (!%p240_p9)   ;;  %v1028_v10 = vld [vmem:[%s1424_s3 + $0x20] sm:$0xff] (!%p240_p9)   ;;  %v1029_v14 = vld [vmem:[%s1424_s3 + $0x28] sm:$0xff] (!%p240_p9)   ;;  %vm410_vm1 = vcmask (!%p240_p9), 785920  }
  0x11   : > { %930 = vmatpush3.bf16.msra.mxu0 (!%p240_p9), %v1024_v0  ;;  %s1101_s18 = smov (!%p240_p9), 96   ;;  %v1030_v22 = vld [vmem:[%s1424_s3 + $0x30] sm:$0xff] (!%p240_p9)   ;;  %v1031_v29 = vld [vmem:[%s1424_s3 + $0x38] sm:$0xff] (!%p240_p9)   ;;  %vm507_vm2 = vcmask (!%p240_p9), 1048320   ;;  %vm1103_vm3 = vmmov (!%p240_p9), 0   ;;  %s740_s12 = sld [smem:[#allocation3]] (!%p240_p9) }
  0x12   : > { %931 = vmatprep.subr.bf16.mxu0 (!%p240_p9), %v1025_v1  ;;  %s276_s13 = sand.u32 (!%p240_p9), 1, %s1090_s24   ;;  %s1104_s5 = smov (!%p240_p9), [#allocation4]  }
  0x13   : > { %s277_s14 = scalar_lea.vmem (!%p240_p9), [#allocation4], %s276_s13  ;;  %s790_s20 = scalar_lea.sflag (!%p240_p9), [#allocation5], %s276_s13 }
  0x14   : > { %s1040_s27 = sshll.u32 (!%p240_p9), %s1104_s5, 4  ;;  %s1041_s27 = int_to_ptr.vmem [resolvable:$false] %s1040_s27 }
  0x15   : > { %932 = vmatpush3.bf16.msra.mxu0 (!%p240_p9), %v1025_v1  ;;  %s1042_s30 = scalar_lea.vmem (!%p240_p9), %s1041_s27, 32 }
  0x16   : > { %933 = vmatprep.subr.bf16.mxu0 (!%p240_p9), %v1026_v2 }
  0x17   : > { %s280_s15 = scalar_select %p279_p10, %s1188_s10, 31 }
  0x19   : > { %s886_s16 = sshll.u32 %s280_s15, 3  ;;  %934 = vmatpush3.bf16.msra.mxu0 %v1026_v2  ;;  %s802_s15 = sshll.u32 %s277_s14, 4  ;;  %s1381_s15 = int_to_ptr.vmem [resolvable:$true] %s802_s15 }
  0x1a   : > { %s1201_s19 = scalar_lea.vmem %s1422_s1, %s886_s16  ;;  %s1215_s29 = scalar_lea.vmem %s1423_s2, %s886_s16  ;;  %935 = vmatprep.subr.bf16.mxu0 %v1027_v7 }
  0x1b   : > { %v332_v3 = vld [vmem:[%s1201_s19 + $0x10] sm:$0xff]  ;;  %v330_v4 = vld [vmem:[%s1201_s19] sm:$0xff]  ;;  %v333_v5 = vld [vmem:[%s1201_s19 + $0x18] sm:$0xff]  ;;  %s1230_s17 = scalar_lea.vmem %s1421_s0, %s886_s16  ;;  %s1379_s16 = scalar_lea.hbm %s1427_s6, %s1188_s10 }
  0x1c   : > { %366 = vrot.lane.b32.xlu1 %v332_v3, %s1100_s22  ;;  %362 = vrot.lane.b32.xlu0 %v330_v4, %s1100_s22  ;;  %v331_v6 = vld [vmem:[%s1201_s19 + $0x8] sm:$0xff]  ;;  %v427_v9 = vld [vmem:[%s1215_s29] sm:$0xff]  ;;  %s1036_s21 = scalar_lea.vmem %s1381_s15, 16  ;;  %p1043_p0 = scmp.lt.s32.totalorder %s1381_s15, %s1041_s27 }
  0x1d   : > { %v428_v8 = vld [vmem:[%s1215_s29 + $0x8] sm:$0xff]  ;;  %v430_v11 = vld [vmem:[%s1215_s29 + $0x18] sm:$0xff]  ;;  %v429_v12 = vld [vmem:[%s1215_s29 + $0x10] sm:$0xff]  ;;  %936 = vmatpush3.bf16.msra.mxu0 %v1027_v7  ;;  %p1037_p11 = scmp.ne.s32.totalorder %s1381_s15, %s1036_s21  ;;  %p1044_p1 = scmp.lt.s32.totalorder %s1042_s30, %s1036_s21 }
  0x1e   : > { %v299_v13 = vld [vmem:[%s1230_s17 + $0x10] sm:$0xff]  ;;  %937 = vmatprep.subr.bf16.mxu0 %v1028_v10  ;;  %v335_v15 = vld [vmem:[%s1201_s19 + $0x28] sm:$0xff]  ;;  %v297_v16 = vld [vmem:[%s1230_s17] sm:$0xff] }
  0x1f   : > { %316 = vst.msk [vmem:[#allocation2 + $0x10] sm:$0xff] %vm313_vm0, %v299_v13  ;;  %v300_v17 = vld [vmem:[%s1230_s17 + $0x18] sm:$0xff]  ;;  %v298_v18 = vld [vmem:[%s1230_s17 + $0x8] sm:$0xff]  ;;  %v334_v19 = vld [vmem:[%s1201_s19 + $0x20] sm:$0xff]  ;;  %p1038_p12 = pnand %p1037_p11, %p1178_p5  ;;  %p1045_p2 = por %p1044_p1, %p1043_p0 }
  0x20   : > { %368 = vrot.lane.b32.xlu1 %v333_v5, %s1100_s22  ;;  %364 = vrot.lane.b32.xlu0 %v331_v6, %s1100_s22  ;;  %314 = vst.msk [vmem:[#allocation2] sm:$0xff] %vm313_vm0, %v297_v16  ;;  %317 = vst.msk [vmem:[#allocation2 + $0x18] sm:$0xff] %vm313_vm0, %v300_v17  ;;  %v302_v20 = vld [vmem:[%s1230_s17 + $0x28] sm:$0xff]  ;;  %v301_v21 = vld [vmem:[%s1230_s17 + $0x20] sm:$0xff] }
  0x21   : > { %315 = vst.msk [vmem:[#allocation2 + $0x8] sm:$0xff] %vm313_vm0, %v298_v18  ;;  %938 = vmatpush3.bf16.msra.mxu0 %v1028_v10  ;;  %319 = vst.msk [vmem:[#allocation2 + $0x28] sm:$0xff] %vm313_vm0, %v302_v20  ;;  %v304_v23 = vld [vmem:[%s1230_s17 + $0x38] sm:$0xff]  ;;  %v303_v24 = vld [vmem:[%s1230_s17 + $0x30] sm:$0xff]  ;;  %p1039_p13 = pneg %p1038_p12 }
  0x22   : > { %939 = vmatprep.subr.bf16.mxu0 %v1029_v14  ;;  %318 = vst.msk [vmem:[#allocation2 + $0x20] sm:$0xff] %vm313_vm0, %v301_v21  ;;  %321 = vst.msk [vmem:[#allocation2 + $0x38] sm:$0xff] %vm313_vm0, %v304_v23  ;;  %v337_v25 = vld [vmem:[%s1201_s19 + $0x38] sm:$0xff]  ;;  %v336_v26 = vld [vmem:[%s1201_s19 + $0x30] sm:$0xff] }
  0x23   : > { %320 = vst.msk [vmem:[#allocation2 + $0x30] sm:$0xff] %vm313_vm0, %v303_v24  ;;  %v306_v27 = vld [vmem:[%s1230_s17 + $0x48] sm:$0xff]  ;;  %v305_v28 = vld [vmem:[%s1230_s17 + $0x40] sm:$0xff]  ;;  %v308_v32 = vld [vmem:[%s1230_s17 + $0x58] sm:$0xff]  ;;  %p1046_p3 = pnand %p1045_p2, %p1039_p13 }
  0x24   : > { %461 = vrot.lane.b32.xlu1 %v428_v8, %s1101_s18  ;;  %459 = vrot.lane.b32.xlu0 %v427_v9, %s1101_s18  ;;  %323 = vst.msk [vmem:[#allocation2 + $0x48] sm:$0xff] %vm313_vm0, %v306_v27  ;;  %322 = vst.msk [vmem:[#allocation2 + $0x40] sm:$0xff] %vm313_vm0, %v305_v28  ;;  %v432_v30 = vld [vmem:[%s1215_s29 + $0x28] sm:$0xff]  ;;  %v431_v31 = vld [vmem:[%s1215_s29 + $0x20] sm:$0xff] }
  0x25   : > { %940 = vmatpush3.bf16.msra.mxu0 %v1029_v14  ;;  %v307_v33 = vld [vmem:[%s1230_s17 + $0x50] sm:$0xff]  ;;  %325 = vst.msk [vmem:[#allocation2 + $0x58] sm:$0xff] %vm313_vm0, %v308_v32  ;;  %v434_v34 = vld [vmem:[%s1215_s29 + $0x38] sm:$0xff]  ;;  %v339_v36 = vld [vmem:[%s1201_s19 + $0x48] sm:$0xff] }
  0x26   : > { %941 = vmatprep.subr.bf16.mxu0 %v1030_v22  ;;  %324 = vst.msk [vmem:[#allocation2 + $0x50] sm:$0xff] %vm313_vm0, %v307_v33  ;;  %v433_v35 = vld [vmem:[%s1215_s29 + $0x30] sm:$0xff]  ;;  %v338_v37 = vld [vmem:[%s1201_s19 + $0x40] sm:$0xff]  ;;  %v341_v38 = vld [vmem:[%s1201_s19 + $0x58] sm:$0xff] }
  0x27   : > { %v340_v39 = vld [vmem:[%s1201_s19 + $0x50] sm:$0xff]  ;;  %v310_v40 = vld [vmem:[%s1230_s17 + $0x68] sm:$0xff]  ;;  %v309_v41 = vld [vmem:[%s1230_s17 + $0x60] sm:$0xff] }
  0x28   : > { %465 = vrot.lane.b32.xlu1 %v430_v11, %s1101_s18  ;;  %463 = vrot.lane.b32.xlu0 %v429_v12, %s1101_s18  ;;  %327 = vst.msk [vmem:[#allocation2 + $0x68] sm:$0xff] %vm313_vm0, %v310_v40  ;;  %326 = vst.msk [vmem:[#allocation2 + $0x60] sm:$0xff] %vm313_vm0, %v309_v41  ;;  %v436_v42 = vld [vmem:[%s1215_s29 + $0x48] sm:$0xff]  ;;  %v435_v43 = vld [vmem:[%s1215_s29 + $0x40] sm:$0xff] }
  0x29   : > { %942 = vmatpush3.bf16.msra.mxu0 %v1030_v22  ;;  %v312_v44 = vld [vmem:[%s1230_s17 + $0x78] sm:$0xff]  ;;  %v311_v45 = vld [vmem:[%s1230_s17 + $0x70] sm:$0xff]  ;;  %v343_v48 = vld [vmem:[%s1201_s19 + $0x68] sm:$0xff] }
  0x2a   : > { %943 = vmatprep.subr.bf16.mxu0 %v1031_v29  ;;  %329 = vst.msk [vmem:[#allocation2 + $0x78] sm:$0xff] %vm313_vm0, %v312_v44  ;;  %328 = vst.msk [vmem:[#allocation2 + $0x70] sm:$0xff] %vm313_vm0, %v311_v45  ;;  %v438_v46 = vld [vmem:[%s1215_s29 + $0x58] sm:$0xff]  ;;  %v437_v47 = vld [vmem:[%s1215_s29 + $0x50] sm:$0xff] }
  0x2b   : > { %v342_v49 = vld [vmem:[%s1201_s19 + $0x60] sm:$0xff]  ;;  %v345_v50 = vld [vmem:[%s1201_s19 + $0x78] sm:$0xff]  ;;  %v344_v51 = vld [vmem:[%s1201_s19 + $0x70] sm:$0xff] }
  0x2c   : > { %372 = vrot.lane.b32.xlu1 %v335_v15, %s1100_s22  ;;  %370 = vrot.lane.b32.xlu0 %v334_v19, %s1100_s22  ;;  %v440_v52 = vld [vmem:[%s1215_s29 + $0x68] sm:$0xff]  ;;  %v439_v53 = vld [vmem:[%s1215_s29 + $0x60] sm:$0xff] }
  0x2d   : > { %944 = vmatpush3.bf16.msra.mxu0 %v1031_v29  ;;  %v442_v54 = vld [vmem:[%s1215_s29 + $0x78] sm:$0xff]  ;;  %v441_v55 = vld [vmem:[%s1215_s29 + $0x70] sm:$0xff] }
  0x30   : > { %376 = vrot.lane.b32.xlu1 %v337_v25, %s1100_s22  ;;  %374 = vrot.lane.b32.xlu0 %v336_v26, %s1100_s22 }
  0x34   : > { %469 = vrot.lane.b32.xlu1 %v432_v30, %s1101_s18  ;;  %467 = vrot.lane.b32.xlu0 %v431_v31, %s1101_s18 }
  0x38   : > { %473 = vrot.lane.b32.xlu1 %v434_v34, %s1101_s18  ;;  %471 = vrot.lane.b32.xlu0 %v433_v35, %s1101_s18 }
  0x3c   : > { %380 = vrot.lane.b32.xlu1 %v339_v36, %s1100_s22  ;;  %378 = vrot.lane.b32.xlu0 %v338_v37, %s1100_s22 }
  0x40   : > { %384 = vrot.lane.b32.xlu1 %v341_v38, %s1100_s22  ;;  %382 = vrot.lane.b32.xlu0 %v340_v39, %s1100_s22 }
  0x44   : > { %477 = vrot.lane.b32.xlu1 %v436_v42, %s1101_s18  ;;  %475 = vrot.lane.b32.xlu0 %v435_v43, %s1101_s18 }
  0x48   : > { %481 = vrot.lane.b32.xlu1 %v438_v46, %s1101_s18  ;;  %479 = vrot.lane.b32.xlu0 %v437_v47, %s1101_s18 }
  0x4c   : > { %388 = vrot.lane.b32.xlu1 %v343_v48, %s1100_s22  ;;  %386 = vrot.lane.b32.xlu0 %v342_v49, %s1100_s22  ;;  %v1102_v48 = vmov 0.0   ;;  %v891_v49 = vld [vmem:[%s1425_s4] ss:$0 sm:$0xff] }
  0x4d   : > { %961 = vmatprep.subr.bf16.mxu1 %v1102_v48  ;;  %977 = vmatprep.mubr.msk.bf16.mxu1 %vm1103_vm3, %v1102_v48 }
  0x50   : > { %392 = vrot.lane.b32.xlu1 %v345_v50, %s1100_s22  ;;  %390 = vrot.lane.b32.xlu0 %v344_v51, %s1100_s22 }
  0x54   : > { %485 = vrot.lane.b32.xlu1 %v440_v52, %s1101_s18  ;;  %483 = vrot.lane.b32.xlu0 %v439_v53, %s1101_s18 }
  0x58   : > { %489 = vrot.lane.b32.xlu1 %v442_v54, %s1101_s18  ;;  %487 = vrot.lane.b32.xlu0 %v441_v55, %s1101_s18 }
  0x8e   : > { %v367_v56 = vpop.permute.xlu1 %366  ;;  %v363_v57 = vpop.permute.xlu0 %362 }
  0x8f   : > { %413 = vst.msk [vmem:[#allocation2 + $0x10] sm:$0xff] %vm410_vm1, %v367_v56  ;;  %411 = vst.msk [vmem:[#allocation2] sm:$0xff] %vm410_vm1, %v363_v57 }
  0x92   : > { %v369_v58 = vpop.permute.xlu1 %368  ;;  %v365_v59 = vpop.permute.xlu0 %364 }
  0x93   : > { %414 = vst.msk [vmem:[#allocation2 + $0x18] sm:$0xff] %vm410_vm1, %v369_v58  ;;  %412 = vst.msk [vmem:[#allocation2 + $0x8] sm:$0xff] %vm410_vm1, %v365_v59 }
  0x96   : > { %v462_v60 = vpop.permute.xlu1 %461  ;;  %v460_v61 = vpop.permute.xlu0 %459 }
  0x97   : > { %509 = vst.msk [vmem:[#allocation2 + $0x8] sm:$0xff] %vm507_vm2, %v462_v60  ;;  %508 = vst.msk [vmem:[#allocation2] sm:$0xff] %vm507_vm2, %v460_v61 }
  0x9a   : > { %v466_v62 = vpop.permute.xlu1 %465  ;;  %v464_v63 = vpop.permute.xlu0 %463 }
  0x9b   : > { %511 = vst.msk [vmem:[#allocation2 + $0x18] sm:$0xff] %vm507_vm2, %v466_v62  ;;  %510 = vst.msk [vmem:[#allocation2 + $0x10] sm:$0xff] %vm507_vm2, %v464_v63 }
  0x9e   : > { %v373_v0 = vpop.permute.xlu1 %372  ;;  %v371_v1 = vpop.permute.xlu0 %370  ;;  %v524_v2 = vld [vmem:[#allocation2] sm:$0xff]  ;;  %v525_v3 = vld [vmem:[#allocation2 + $0x8] sm:$0xff] }
  0x9f   : > { %416 = vst.msk [vmem:[#allocation2 + $0x28] sm:$0xff] %vm410_vm1, %v373_v0  ;;  %415 = vst.msk [vmem:[#allocation2 + $0x20] sm:$0xff] %vm410_vm1, %v371_v1  ;;  %v540_v4 = vpack.c.bf16 %v525_v3, %v524_v2 }
  0xa1   : > { %945 = vmatprep.mubr.bf16.mxu0 %v540_v4 }
  0xa2   : > { %v377_v5 = vpop.permute.xlu1 %376  ;;  %v375_v6 = vpop.permute.xlu0 %374  ;;  %v526_v7 = vld [vmem:[#allocation2 + $0x10] sm:$0xff]  ;;  %v527_v8 = vld [vmem:[#allocation2 + $0x18] sm:$0xff] }
  0xa3   : > { %418 = vst.msk [vmem:[#allocation2 + $0x38] sm:$0xff] %vm410_vm1, %v377_v5  ;;  %417 = vst.msk [vmem:[#allocation2 + $0x30] sm:$0xff] %vm410_vm1, %v375_v6  ;;  %v541_v9 = vpack.c.bf16 %v527_v8, %v526_v7 }
  0xa5   : > { %946 = vmatmul.mubr.bf16.vlgmr.msra.gmra.mrb[0].mxu0 %v541_v9 }
  0xa6   : > { %v470_v10 = vpop.permute.xlu1 %469  ;;  %v468_v11 = vpop.permute.xlu0 %467 }
  0xa7   : > { %513 = vst.msk [vmem:[#allocation2 + $0x28] sm:$0xff] %vm507_vm2, %v470_v10  ;;  %512 = vst.msk [vmem:[#allocation2 + $0x20] sm:$0xff] %vm507_vm2, %v468_v11 }
  0xaa   : > { %v474_v12 = vpop.permute.xlu1 %473  ;;  %v472_v13 = vpop.permute.xlu0 %471 }
  0xab   : > { %515 = vst.msk [vmem:[#allocation2 + $0x38] sm:$0xff] %vm507_vm2, %v474_v12  ;;  %514 = vst.msk [vmem:[#allocation2 + $0x30] sm:$0xff] %vm507_vm2, %v472_v13 }
  0xae   : > { %v381_v14 = vpop.permute.xlu1 %380  ;;  %v379_v15 = vpop.permute.xlu0 %378  ;;  %v528_v16 = vld [vmem:[#allocation2 + $0x20] sm:$0xff]  ;;  %v529_v17 = vld [vmem:[#allocation2 + $0x28] sm:$0xff] }
  0xaf   : > { %420 = vst.msk [vmem:[#allocation2 + $0x48] sm:$0xff] %vm410_vm1, %v381_v14  ;;  %419 = vst.msk [vmem:[#allocation2 + $0x40] sm:$0xff] %vm410_vm1, %v379_v15  ;;  %v542_v18 = vpack.c.bf16 %v529_v17, %v528_v16 }
  0xb1   : > { %949 = vmatprep.mubr.bf16.mxu0 %v542_v18 }
  0xb2   : > { %v385_v19 = vpop.permute.xlu1 %384  ;;  %v383_v20 = vpop.permute.xlu0 %382  ;;  %v530_v21 = vld [vmem:[#allocation2 + $0x30] sm:$0xff]  ;;  %v531_v22 = vld [vmem:[#allocation2 + $0x38] sm:$0xff] }
  0xb3   : > { %422 = vst.msk [vmem:[#allocation2 + $0x58] sm:$0xff] %vm410_vm1, %v385_v19  ;;  %421 = vst.msk [vmem:[#allocation2 + $0x50] sm:$0xff] %vm410_vm1, %v383_v20  ;;  %v543_v23 = vpack.c.bf16 %v531_v22, %v530_v21 }
  0xb5   : > { %950 = vmatmul.mubr.bf16.gmra.mrb[4].mxu0 %v543_v23 }
  0xb6   : > { %v478_v24 = vpop.permute.xlu1 %477  ;;  %v476_v25 = vpop.permute.xlu0 %475 }
  0xb7   : > { %517 = vst.msk [vmem:[#allocation2 + $0x48] sm:$0xff] %vm507_vm2, %v478_v24  ;;  %516 = vst.msk [vmem:[#allocation2 + $0x40] sm:$0xff] %vm507_vm2, %v476_v25 }
  0xba   : > { %v482_v26 = vpop.permute.xlu1 %481  ;;  %v480_v27 = vpop.permute.xlu0 %479 }
  0xbb   : > { %519 = vst.msk [vmem:[#allocation2 + $0x58] sm:$0xff] %vm507_vm2, %v482_v26  ;;  %518 = vst.msk [vmem:[#allocation2 + $0x50] sm:$0xff] %vm507_vm2, %v480_v27 }
  0xbe   : > { %v389_v28 = vpop.permute.xlu1 %388  ;;  %v387_v29 = vpop.permute.xlu0 %386  ;;  %v532_v30 = vld [vmem:[#allocation2 + $0x40] sm:$0xff]  ;;  %v533_v31 = vld [vmem:[#allocation2 + $0x48] sm:$0xff] }
  0xbf   : > { %424 = vst.msk [vmem:[#allocation2 + $0x68] sm:$0xff] %vm410_vm1, %v389_v28  ;;  %423 = vst.msk [vmem:[#allocation2 + $0x60] sm:$0xff] %vm410_vm1, %v387_v29  ;;  %v544_v32 = vpack.c.bf16 %v533_v31, %v532_v30 }
  0xc1   : > { %953 = vmatprep.mubr.bf16.mxu0 %v544_v32 }
  0xc2   : > { %v393_v33 = vpop.permute.xlu1 %392  ;;  %v391_v34 = vpop.permute.xlu0 %390  ;;  %v534_v35 = vld [vmem:[#allocation2 + $0x50] sm:$0xff]  ;;  %v535_v36 = vld [vmem:[#allocation2 + $0x58] sm:$0xff] }
  0xc3   : > { %426 = vst.msk [vmem:[#allocation2 + $0x78] sm:$0xff] %vm410_vm1, %v393_v33  ;;  %425 = vst.msk [vmem:[#allocation2 + $0x70] sm:$0xff] %vm410_vm1, %v391_v34  ;;  %v545_v37 = vpack.c.bf16 %v535_v36, %v534_v35 }
  0xc5   : > { %954 = vmatmul.mubr.bf16.gmra.mrb[8].mxu0 %v545_v37 }
  0xc6   : > { %v486_v38 = vpop.permute.xlu1 %485  ;;  %v484_v39 = vpop.permute.xlu0 %483 }
  0xc7   : > { %521 = vst.msk [vmem:[#allocation2 + $0x68] sm:$0xff] %vm507_vm2, %v486_v38  ;;  %520 = vst.msk [vmem:[#allocation2 + $0x60] sm:$0xff] %vm507_vm2, %v484_v39 }
  0xca   : > { %v490_v40 = vpop.permute.xlu1 %489  ;;  %v488_v41 = vpop.permute.xlu0 %487 }
  0xcb   : > { %523 = vst.msk [vmem:[#allocation2 + $0x78] sm:$0xff] %vm507_vm2, %v490_v40  ;;  %522 = vst.msk [vmem:[#allocation2 + $0x70] sm:$0xff] %vm507_vm2, %v488_v41 }
  0xce   : > { %v536_v42 = vld [vmem:[#allocation2 + $0x60] sm:$0xff]  ;;  %v537_v43 = vld [vmem:[#allocation2 + $0x68] sm:$0xff] }
  0xcf   : > { %v546_v44 = vpack.c.bf16 %v537_v43, %v536_v42  ;;  %v730_v42 = vld [vmem:[%s1425_s4 + $0x1] sm:$0x1] }
  0xd0   : > { %v731_v43 = vpack.c.bf16 %v730_v42, %v730_v42 }
  0xd1   : > { %957 = vmatprep.mubr.bf16.mxu0 %v546_v44  ;;  %v741_v44 = vstv %s740_s12 }
  0xd2   : > { %v538_v45 = vld [vmem:[#allocation2 + $0x70] sm:$0xff]  ;;  %v539_v46 = vld [vmem:[#allocation2 + $0x78] sm:$0xff] }
  0xd3   : > { %v547_v47 = vpack.c.bf16 %v539_v46, %v538_v45 }
  0xd5   : > { %958 = vmatmul.mubr.bf16.gmra.mrb[12].mxu0 %v547_v47 }
 0x178   : > { %v947_v50 = vpop.f32.mrb[0].mxu0 }
 0x179   : > { %v660_v51 = vadd.f32 %v947_v50, %v891_v49  ;;  %v651_v52 = vpop.f32.mrb[1].mxu0 }
 0x17a   : > { %v652_v53 = vadd.f32 %v891_v49, %v651_v52  ;;  %v948_v54 = vpop.f32.mrb[2].mxu0 }
 0x17b   : > { %v663_v55 = vadd.f32 %v948_v54, %v891_v49  ;;  %v654_v56 = vpop.f32.mrb[3].mxu0  ;;  %v716_v58 = vmax.f32 %v660_v51, 0.0 }
 0x17c   : > { %v655_v57 = vadd.f32 %v891_v49, %v654_v56  ;;  %v714_v60 = vmax.f32 %v652_v53, 0.0 }
 0x17d   : > { %v717_v59 = vmax.f32 %v663_v55, 0.0 }
 0x17e   : > { %v715_v61 = vmax.f32 %v655_v57, 0.0 }
 0x17f   : > { %v733_v62 = vpack.c.bf16 %v717_v59, %v716_v58 }
 0x180   : > { %v732_v63 = vpack.c.bf16 %v715_v61, %v714_v60 }
 0x182   : > { %962 = vmatpush3.bf16.xpose.msra.mxu1 %v732_v63 }
 0x183   : > { %963 = vmatprep.subr.bf16.mxu1 %v1102_v48 }
 0x188   : > { %v951_v0 = vpop.f32.mrb[4].mxu0 }
 0x189   : > { %v676_v1 = vadd.f32 %v951_v0, %v891_v49  ;;  %v667_v2 = vpop.f32.mrb[5].mxu0 }
 0x18a   : > { %v668_v3 = vadd.f32 %v891_v49, %v667_v2  ;;  %v952_v4 = vpop.f32.mrb[6].mxu0  ;;  %964 = vmatpush3.bf16.xpose.msra.mxu1 %v733_v62 }
 0x18b   : > { %v679_v5 = vadd.f32 %v952_v4, %v891_v49  ;;  %v670_v6 = vpop.f32.mrb[7].mxu0  ;;  %965 = vmatprep.subr.bf16.mxu1 %v1102_v48  ;;  %v720_v8 = vmax.f32 %v676_v1, 0.0 }
 0x18c   : > { %v671_v7 = vadd.f32 %v891_v49, %v670_v6  ;;  %v718_v10 = vmax.f32 %v668_v3, 0.0 }
 0x18d   : > { %v721_v9 = vmax.f32 %v679_v5, 0.0 }
 0x18e   : > { %v719_v11 = vmax.f32 %v671_v7, 0.0 }
 0x18f   : > { %v735_v12 = vpack.c.bf16 %v721_v9, %v720_v8 }
 0x190   : > { %v734_v13 = vpack.c.bf16 %v719_v11, %v718_v10 }
 0x192   : > { %966 = vmatpush3.bf16.xpose.msra.mxu1 %v734_v13 }
 0x193   : > { %967 = vmatprep.subr.bf16.mxu1 %v1102_v48 }
 0x198   : > { %v955_v14 = vpop.f32.mrb[8].mxu0 }
 0x199   : > { %v692_v15 = vadd.f32 %v955_v14, %v891_v49  ;;  %v683_v16 = vpop.f32.mrb[9].mxu0 }
 0x19a   : > { %v684_v17 = vadd.f32 %v891_v49, %v683_v16  ;;  %v956_v18 = vpop.f32.mrb[10].mxu0  ;;  %968 = vmatpush3.bf16.xpose.msra.mxu1 %v735_v12 }
 0x19b   : > { %v695_v19 = vadd.f32 %v956_v18, %v891_v49  ;;  %v686_v20 = vpop.f32.mrb[11].mxu0  ;;  %969 = vmatprep.subr.bf16.mxu1 %v1102_v48  ;;  %v724_v22 = vmax.f32 %v692_v15, 0.0 }
 0x19c   : > { %v687_v21 = vadd.f32 %v891_v49, %v686_v20  ;;  %v722_v24 = vmax.f32 %v684_v17, 0.0 }
 0x19d   : > { %v725_v23 = vmax.f32 %v695_v19, 0.0 }
 0x19e   : > { %v723_v25 = vmax.f32 %v687_v21, 0.0 }
 0x19f   : > { %v737_v26 = vpack.c.bf16 %v725_v23, %v724_v22 }
 0x1a0   : > { %v736_v27 = vpack.c.bf16 %v723_v25, %v722_v24 }
 0x1a2   : > { %970 = vmatpush3.bf16.xpose.msra.mxu1 %v736_v27 }
 0x1a3   : > { %971 = vmatprep.subr.bf16.mxu1 %v1102_v48 }
 0x1a8   : > { %v959_v28 = vpop.f32.mrb[12].mxu0 }
 0x1a9   : > { %v708_v29 = vadd.f32 %v959_v28, %v891_v49  ;;  %v699_v30 = vpop.f32.mrb[13].mxu0 }
 0x1aa   : > { %v700_v31 = vadd.f32 %v891_v49, %v699_v30  ;;  %v960_v32 = vpop.f32.mrb[14].mxu0  ;;  %972 = vmatpush3.bf16.xpose.msra.mxu1 %v737_v26 }
 0x1ab   : > { %v711_v33 = vadd.f32 %v960_v32, %v891_v49  ;;  %v702_v34 = vpop.f32.mrb[15].mxu0  ;;  %973 = vmatprep.subr.bf16.mxu1 %v1102_v48  ;;  %v728_v36 = vmax.f32 %v708_v29, 0.0 }
 0x1ac   : > { %v703_v35 = vadd.f32 %v891_v49, %v702_v34  ;;  %v726_v38 = vmax.f32 %v700_v31, 0.0 }
 0x1ad   : > { %v729_v37 = vmax.f32 %v711_v33, 0.0 }
 0x1ae   : > { %v727_v39 = vmax.f32 %v703_v35, 0.0 }
 0x1af   : > { %v739_v40 = vpack.c.bf16 %v729_v37, %v728_v36 }
 0x1b0   : > { %v738_v41 = vpack.c.bf16 %v727_v39, %v726_v38 }
 0x1b2   : > { %974 = vmatpush3.bf16.xpose.msra.mxu1 %v738_v41 }
 0x1b3   : > { %975 = vmatprep.subr.bf16.mxu1 %v1102_v48 }
 0x1ba   : > { %976 = vmatpush3.bf16.xpose.msra.mxu1 %v739_v40 }
 0x1c1   : > { %978 = vmatmul.mubr.bf16.vlgmr.msra.gmra.mrb[0].mxu1 %v731_v43 }
 0x294   : > { %v776_v45 = vpop.f32.mrb[0].mxu1 }
 0x295   : > { %v777_v46 = vadd.f32 %v776_v45, %v741_v44  ;;  %v979_v47 = vpop.f32.mrb[1].mxu1 }
 0x296   : > { %v779_v49 = vpop.f32.mrb[2].mxu1 }
 0x297   : > { %v900_v50 = vmul.f32 -1.442695, %v777_v46  ;;  %v980_v51 = vpop.f32.mrb[3].mxu1 }
 0x299   : > { %1032 = vpow2.f32 %v900_v50 }
 0x2a3   : > { %v1033_v48 = vpop.eup %1032 }
 0x2a4   : > { %v785_v52 = vadd.f32 1.0, %v1033_v48 }
 0x2a6   : > { %1034 = vrcp.f32 %v785_v52 }
 0x2b0   : > { %v1035_v53 = vpop.eup %1034 }
 0x2b1   : > { %788 = vst [vmem:[%s277_s14] sm:$0x1] %v1035_v53 }
 0x2b2   : > { %1049 = shalt.err (!%p1046_p3)
}
 0x2b3   : > { %s1050_s10 = scalar_lea.hbm %s1379_s16, 16  ;;  %s1054_s29 = scalar_lea.hbm %s1427_s6, 32 }
 0x2b4   : > { %p1051_p4 = scmp.ne.s32.totalorder %s1379_s16, %s1050_s10  ;;  %p1055_p9 = scmp.lt.u32.totalorder %s1379_s16, %s1427_s6 }
 0x2b5   : > { %p1056_p10 = scmp.lt.u32.totalorder %s1054_s29, %s1050_s10  ;;  %p1058_p12 = scmp.lt.u32.totalorder %s1050_s10, %s1379_s16 }
 0x2b6   : > { %p1052_p7 = pnand %p1051_p4, %p1178_p5 }
 0x2b7   : > { %p1057_p11 = por %p1056_p10, %p1055_p9 }
 0x2b8   : > { %p1053_p8 = pneg %p1052_p7 }
 0x2b9   : > { %p1059_p13 = por %p1058_p12, %p1057_p11 }
 0x2bb   : > { %p1060_p0 = pnand %p1059_p13, %p1053_p8 }
 0x2bd   : > { %1063 = shalt.err (!%p1060_p0)
}
 0x2be   : > { %981 = dma.vmem_to_hbm [thread:$0]  (%p1178_p5), %s1381_s15, 16, %s1379_s16, %s790_s20  }
 0x2bf PF: > { %p987_p1 = scmp.ge.s32.totalorder %s1098_s26, 2  ;;  %s814_s13 = sand.u32 1, %s1086_s23  }
 0x2c0   : > { %s815_s14 = scalar_lea.sflag [#allocation5], %s814_s13 }
 0x2c1   : > { %p984_p2 = pnand %p987_p1, %p1182_p6 }
 0x2c3   : > { %1081 = dma.done.wait (!%p984_p2), %s815_s14, 16  }
 0x2c4   : > { %1083 = vsyncadd (!%p984_p2), %s815_s14, 4294967280  ;;  %p17_p3 = scmp.ge.s32.totalorder %s1166_s28, 4   ;;  %s1430_s23 = smov %s1090_s24 }
 0x2c5   : > { %s1431_s24 = smov %s1094_s25  ;;  %s1432_s25 = smov %s1176_s7 }
 0x2c6   : > { %s1433_s26 = smov %s1166_s28  ;;  %19 = sbr.rel (!%p17_p3) target bundleno = 5 (0x5), region = 85 }
 0x2cd   :  { %819 = vsyncpa [#allocation5], 1 }
 0x2ce   :  { %821 = vsyncpa [#allocation5 + $0x1], 1 }

</bundles_post_ra>
